<compile_context>
chip_gen: v7x
topology: tpu7x:2x2x1
jax: 0.10.0
libtpu: 0.0.40
codegen_flags: <defaults>
</compile_context>

<pallas_src>
import functools

import jax
import jax.numpy as jnp
from jax.experimental import pallas as pl
from jax.experimental.pallas import tpu as pltpu

KH = KW = 3   # kernel_size
SH = SW = 3   # nn.MaxPool2d: stride defaults to kernel_size; padding=0, dilation=1


def _round_up(x, m):
    return ((x + m - 1) // m) * m


def _maxpool_kernel(x_ref, s_ref, o_ref, *, W, Lm):
    """One row-block of outputs.

    x_ref: (TRo, 3*W)  three consecutive image rows per output row, lane-concatenated
    s_ref: (Lm, Wo)    bf16 0/1 selection matrix, S[i, j] = (i == 3*j)
    o_ref: (TRo, Wo)
    """
    # 3x3 window max via nine lane-offset slices (unaligned lane slices are cheap
    # load/XLU work; HBM remains the binding resource).
    m = None
    for kh in range(KH):
        for kw in range(KW):
            v = x_ref[:, pl.ds(kh * W + kw, Lm)]
            m = v if m is None else jnp.maximum(m, v)
    m = m.astype(jnp.float32)         # m[:, 3j] is the window max for output column j

    fin = jnp.abs(m) < jnp.float32(jnp.inf)      # False for +-inf and NaN
    isnan = m != m
    mf = jnp.where(fin, m, 0.0)                  # keep non-finite values off the MXU

    # Exact f32 = c0 + c1 + c2 bf16 decomposition -> decimation is bit-exact.
    c0 = mf.astype(jnp.bfloat16)
    r = mf - c0.astype(jnp.float32)
    c1 = r.astype(jnp.bfloat16)
    c2 = (r - c1.astype(jnp.float32)).astype(jnp.bfloat16)

    sel = s_ref[...]
    val = jnp.dot(c2, sel, preferred_element_type=jnp.float32)
    val = val + jnp.dot(c1, sel, preferred_element_type=jnp.float32)
    val = val + jnp.dot(c0, sel, preferred_element_type=jnp.float32)

    # Non-finite passthrough: 1 -> +inf, 2 -> -inf, 3 -> NaN.
    code = jnp.where(
        fin, 0.0, jnp.where(isnan, 3.0, jnp.where(m > 0, 1.0, 2.0))
    ).astype(jnp.bfloat16)
    csel = jnp.dot(code, sel, preferred_element_type=jnp.float32)
    special = jnp.where(
        csel == 3.0,
        jnp.float32(jnp.nan),
        jnp.where(csel == 1.0, jnp.float32(jnp.inf), jnp.float32(-jnp.inf)),
    )
    out = jnp.where(csel > 0.0, special, val)
    o_ref[...] = out.astype(o_ref.dtype)


def _choose_rows(M, W, itemsize):
    """Rows of the (M, 3W) slab processed per grid step, and the number of steps."""
    sub = max(8, 32 // itemsize)                    # dense-sublane row multiple per dtype
    row_bytes = _round_up(3 * W, 128) * itemsize    # lane-padded VMEM footprint per row
    total = M * row_bytes

    target_block = 6 * 1024 * 1024                  # ~6 MiB of input per grid step
    min_block = 1 * 1024 * 1024                     # don't shrink steps below ~1 MiB

    if total <= 2 * min_block or M <= sub:
        return M, 1                                 # single block (TRo == M is always legal)

    nblk = max(pl.cdiv(total, target_block), 4)     # >=4 steps: pipelining + both v7x TCs
    nblk = min(nblk, max(total // min_block, 2))
    nblk = min(nblk, pl.cdiv(M, sub))
    nblk = max(nblk, 2)
    if nblk % 2:
        nblk += 1                                   # even split across v7x's two TensorCores
    tro = _round_up(pl.cdiv(M, nblk), sub)
    return tro, pl.cdiv(M, tro)


@jax.jit
def maxpool2d_3x3(x):
    """x: (N, C, H, W) -> (N, C, Ho, Wo); matches nn.MaxPool2d(kernel_size=3)."""
    N, C, H, W = x.shape
    if H < KH or W < KW:
        raise ValueError("spatial dims must be >= kernel_size")
    if not jnp.issubdtype(x.dtype, jnp.floating):
        # TODO(synk): integer dtypes would need a non-MXU decimation path.
        raise NotImplementedError("maxpool2d_3x3 supports floating dtypes only")

    Ho = (H - KH) // SH + 1
    Wo = (W - KW) // SW + 1
    M = N * C * Ho
    Lm = 3 * Wo - 2                      # window-start lanes used within a slab row

    # Crop unused trailing image rows (no-op when H % 3 == 0); unused trailing W
    # columns are simply never read in-kernel, so no W-crop / copy is needed.
    xh = x if H == KH * Ho else x[:, :, : KH * Ho, :]
    slab = xh.reshape(M, 3 * W)          # free, contiguous reshape

    # 0/1 lane-decimation matrix (shape-only -> constant-folded by XLA).
    ii = jax.lax.broadcasted_iota(jnp.int32, (Lm, Wo), 0)
    jj = jax.lax.broadcasted_iota(jnp.int32, (Lm, Wo), 1)
    sel = (ii == 3 * jj).astype(jnp.bfloat16)

    TRo, nblk = _choose_rows(M, W, x.dtype.itemsize)
    kernel = functools.partial(_maxpool_kernel, W=W, Lm=Lm)

    out = pl.pallas_call(
        kernel,
        out_shape=jax.ShapeDtypeStruct((M, Wo), x.dtype),
        grid=(nblk,),
        in_specs=[
            pl.BlockSpec((TRo, 3 * W), lambda i: (i, 0)),
            pl.BlockSpec((Lm, Wo), lambda i: (0, 0)),
        ],
        out_specs=pl.BlockSpec((TRo, Wo), lambda i: (i, 0)),
        compiler_params=pltpu.CompilerParams(
            dimension_semantics=("parallel",),
            vmem_limit_bytes=48 * 1024 * 1024,
        ),
    )(slab, sel)

    return out.reshape(N, C, Ho, Wo)


def _reference_maxpool(x):
    N, C, H, W = x.shape
    Ho = (H - KH) // SH + 1
    Wo = (W - KW) // SW + 1
    xc = x[:, :, : KH * Ho, : KW * Wo]
    return xc.reshape(N, C, Ho, KH, Wo, KW).max(axis=(3, 5))


if __name__ == "__main__":
    key = jax.random.PRNGKey(0)
    k_small, k_med = jax.random.split(key)

    # Small case (module-scale shapes): single-block path, H % 3 != 0 crop.
    x_small = jax.random.normal(k_small, (2, 4, 16, 16), dtype=jnp.float32)
    out_small = jax.block_until_ready(maxpool2d_3x3(x_small))
    assert out_small.shape == (2, 4, 5, 5), out_small.shape
    assert jnp.allclose(out_small, _reference_maxpool(x_small)), "small-case mismatch"

    # Non-finite handling: a fully -inf window and a lone +inf element.
    x_sp = x_small.at[0, 0, 0:3, 0:3].set(-jnp.inf).at[1, 2, 5, 7].set(jnp.inf)
    out_sp = jax.block_until_ready(maxpool2d_3x3(x_sp))
    assert jnp.allclose(out_sp, _reference_maxpool(x_sp)), "inf-case mismatch"

    # Medium case: multi-block grid (>=4 pipelined steps), crop-free (195 % 3 == 0).
    x_med = jax.random.normal(k_med, (2, 16, 195, 195), dtype=jnp.float32)
    out_med = jax.block_until_ready(maxpool2d_3x3(x_med))
    assert out_med.shape == (2, 16, 65, 65), out_med.shape
    assert jnp.allclose(out_med, _reference_maxpool(x_med)), "medium-case mismatch"

    print("KERNEL_OK")
</pallas_src>

<mosaic_0001>
module attributes {stable_mosaic.version = 11 : i64} {
  func.func @_maxpool_kernel(%arg0: i32, %arg1: memref<40x48xf32, #tpu.memory_space<vmem>>, %arg2: memref<13x5xbf16, #tpu.memory_space<vmem>>, %arg3: memref<40x5xf32, #tpu.memory_space<vmem>>) attributes {dimension_semantics = [#tpu.dimension_semantics<parallel>], iteration_bounds = array<i64: 1>, scalar_prefetch = 0 : i64, scratch_operands = 0 : i64, tpu.core_type = #tpu.core_type<tc>, window_params = [{transform_indices = @transform_0, window_bounds = array<i64: 40, 48>}, {pipeline_mode = #tpu.pipeline_mode<synchronous>, transform_indices = @transform_1, window_bounds = array<i64: 13, 5>}, {transform_indices = @transform_2, window_bounds = array<i64: 40, 5>}]} {
    %c0 = arith.constant 0 : index
    %c0_0 = arith.constant 0 : index
    %0 = vector.load %arg1[%c0, %c0_0] : memref<40x48xf32, #tpu.memory_space<vmem>>, vector<40x13xf32>
    %c0_1 = arith.constant 0 : index
    %c1 = arith.constant 1 : index
    %1 = vector.load %arg1[%c0_1, %c1] : memref<40x48xf32, #tpu.memory_space<vmem>>, vector<40x13xf32>
    %2 = arith.maximumf %0, %1 : vector<40x13xf32>
    %c0_2 = arith.constant 0 : index
    %c2 = arith.constant 2 : index
    %3 = vector.load %arg1[%c0_2, %c2] : memref<40x48xf32, #tpu.memory_space<vmem>>, vector<40x13xf32>
    %4 = arith.maximumf %2, %3 : vector<40x13xf32>
    %c0_3 = arith.constant 0 : index
    %c16 = arith.constant 16 : index
    %5 = vector.load %arg1[%c0_3, %c16] : memref<40x48xf32, #tpu.memory_space<vmem>>, vector<40x13xf32>
    %6 = arith.maximumf %4, %5 : vector<40x13xf32>
    %c0_4 = arith.constant 0 : index
    %c17 = arith.constant 17 : index
    %7 = vector.load %arg1[%c0_4, %c17] : memref<40x48xf32, #tpu.memory_space<vmem>>, vector<40x13xf32>
    %8 = arith.maximumf %6, %7 : vector<40x13xf32>
    %c0_5 = arith.constant 0 : index
    %c18 = arith.constant 18 : index
    %9 = vector.load %arg1[%c0_5, %c18] : memref<40x48xf32, #tpu.memory_space<vmem>>, vector<40x13xf32>
    %10 = arith.maximumf %8, %9 : vector<40x13xf32>
    %c0_6 = arith.constant 0 : index
    %c32 = arith.constant 32 : index
    %11 = vector.load %arg1[%c0_6, %c32] : memref<40x48xf32, #tpu.memory_space<vmem>>, vector<40x13xf32>
    %12 = arith.maximumf %10, %11 : vector<40x13xf32>
    %c0_7 = arith.constant 0 : index
    %c33 = arith.constant 33 : index
    %13 = vector.load %arg1[%c0_7, %c33] : memref<40x48xf32, #tpu.memory_space<vmem>>, vector<40x13xf32>
    %14 = arith.maximumf %12, %13 : vector<40x13xf32>
    %c0_8 = arith.constant 0 : index
    %c34 = arith.constant 34 : index
    %15 = vector.load %arg1[%c0_8, %c34] : memref<40x48xf32, #tpu.memory_space<vmem>>, vector<40x13xf32>
    %16 = arith.maximumf %14, %15 : vector<40x13xf32>
    %17 = math.absf %16 : vector<40x13xf32>
    %cst = arith.constant 0x7F800000 : f32
    %18 = vector.broadcast %cst : f32 to vector<40x13xf32>
    %19 = arith.cmpf olt, %17, %18 : vector<40x13xf32>
    %20 = arith.cmpf one, %16, %16 : vector<40x13xf32>
    %cst_9 = arith.constant 0.000000e+00 : f32
    %21 = vector.broadcast %cst_9 : f32 to vector<40x13xf32>
    %22 = arith.select %19, %16, %21 : vector<40x13xi1>, vector<40x13xf32>
    %23 = arith.truncf %22 : vector<40x13xf32> to vector<40x13xbf16>
    %24 = arith.extf %23 : vector<40x13xbf16> to vector<40x13xf32>
    %25 = arith.subf %22, %24 : vector<40x13xf32>
    %26 = arith.truncf %25 : vector<40x13xf32> to vector<40x13xbf16>
    %27 = arith.extf %26 : vector<40x13xbf16> to vector<40x13xf32>
    %28 = arith.subf %25, %27 : vector<40x13xf32>
    %29 = arith.truncf %28 : vector<40x13xf32> to vector<40x13xbf16>
    %c0_10 = arith.constant 0 : index
    %c0_11 = arith.constant 0 : index
    %30 = vector.load %arg2[%c0_10, %c0_11] : memref<13x5xbf16, #tpu.memory_space<vmem>>, vector<13x5xbf16>
    %cst_12 = arith.constant dense<0.000000e+00> : vector<40x5xf32>
    %31 = tpu.matmul %29, %30, %cst_12 {dimension_numbers = #tpu.dot_dimension_numbers<[1], [0], [0], [1], [0, 0, 1, 1], [], []>} : vector<40x13xbf16>, vector<13x5xbf16>, vector<40x5xf32> -> vector<40x5xf32>
    %cst_13 = arith.constant dense<0.000000e+00> : vector<40x5xf32>
    %32 = tpu.matmul %26, %30, %cst_13 {dimension_numbers = #tpu.dot_dimension_numbers<[1], [0], [0], [1], [0, 0, 1, 1], [], []>} : vector<40x13xbf16>, vector<13x5xbf16>, vector<40x5xf32> -> vector<40x5xf32>
    %33 = arith.addf %31, %32 : vector<40x5xf32>
    %cst_14 = arith.constant dense<0.000000e+00> : vector<40x5xf32>
    %34 = tpu.matmul %23, %30, %cst_14 {dimension_numbers = #tpu.dot_dimension_numbers<[1], [0], [0], [1], [0, 0, 1, 1], [], []>} : vector<40x13xbf16>, vector<13x5xbf16>, vector<40x5xf32> -> vector<40x5xf32>
    %35 = arith.addf %33, %34 : vector<40x5xf32>
    %cst_15 = arith.constant 0.000000e+00 : f32
    %36 = vector.broadcast %cst_15 : f32 to vector<40x13xf32>
    %37 = arith.cmpf ogt, %16, %36 : vector<40x13xf32>
    %cst_16 = arith.constant 1.000000e+00 : f32
    %cst_17 = arith.constant 2.000000e+00 : f32
    %38 = vector.broadcast %cst_16 : f32 to vector<40x13xf32>
    %39 = vector.broadcast %cst_17 : f32 to vector<40x13xf32>
    %40 = arith.select %37, %38, %39 : vector<40x13xi1>, vector<40x13xf32>
    %cst_18 = arith.constant 3.000000e+00 : f32
    %41 = vector.broadcast %cst_18 : f32 to vector<40x13xf32>
    %42 = arith.select %20, %41, %40 : vector<40x13xi1>, vector<40x13xf32>
    %cst_19 = arith.constant 0.000000e+00 : f32
    %43 = vector.broadcast %cst_19 : f32 to vector<40x13xf32>
    %44 = arith.select %19, %43, %42 : vector<40x13xi1>, vector<40x13xf32>
    %45 = arith.truncf %44 : vector<40x13xf32> to vector<40x13xbf16>
    %cst_20 = arith.constant dense<0.000000e+00> : vector<40x5xf32>
    %46 = tpu.matmul %45, %30, %cst_20 {dimension_numbers = #tpu.dot_dimension_numbers<[1], [0], [0], [1], [0, 0, 1, 1], [], []>} : vector<40x13xbf16>, vector<13x5xbf16>, vector<40x5xf32> -> vector<40x5xf32>
    %cst_21 = arith.constant 3.000000e+00 : f32
    %47 = vector.broadcast %cst_21 : f32 to vector<40x5xf32>
    %48 = arith.cmpf oeq, %46, %47 : vector<40x5xf32>
    %cst_22 = arith.constant 1.000000e+00 : f32
    %49 = vector.broadcast %cst_22 : f32 to vector<40x5xf32>
    %50 = arith.cmpf oeq, %46, %49 : vector<40x5xf32>
    %cst_23 = arith.constant 0x7F800000 : f32
    %cst_24 = arith.constant 0xFF800000 : f32
    %51 = vector.broadcast %cst_23 : f32 to vector<40x5xf32>
    %52 = vector.broadcast %cst_24 : f32 to vector<40x5xf32>
    %53 = arith.select %50, %51, %52 : vector<40x5xi1>, vector<40x5xf32>
    %cst_25 = arith.constant 0x7FC00000 : f32
    %54 = vector.broadcast %cst_25 : f32 to vector<40x5xf32>
    %55 = arith.select %48, %54, %53 : vector<40x5xi1>, vector<40x5xf32>
    %cst_26 = arith.constant 0.000000e+00 : f32
    %56 = vector.broadcast %cst_26 : f32 to vector<40x5xf32>
    %57 = arith.cmpf ogt, %46, %56 : vector<40x5xf32>
    %58 = arith.select %57, %55, %35 : vector<40x5xi1>, vector<40x5xf32>
    %c0_27 = arith.constant 0 : index
    %c0_28 = arith.constant 0 : index
    %59 = vector.load %arg3[%c0_27, %c0_28] : memref<40x5xf32, #tpu.memory_space<vmem>>, vector<40x5xf32>
    tpu.vector_store %arg3[%c0_27, %c0_28], %58 {strides = array<i32>} : memref<40x5xf32, #tpu.memory_space<vmem>>, vector<40x5xf32>,
    return
  }
  func.func @transform_0(%arg0: i32) -> (i32, i32) {
    %c0_i32 = arith.constant 0 : i32
    %c0_i32_0 = arith.constant 0 : i32
    return %arg0, %c0_i32 : i32, i32
  }
  func.func @transform_1(%arg0: i32) -> (i32, i32) {
    %c0_i32 = arith.constant 0 : i32
    %c0_i32_0 = arith.constant 0 : i32
    %c0_i32_1 = arith.constant 0 : i32
    return %c0_i32, %c0_i32_0 : i32, i32
  }
  func.func @transform_2(%arg0: i32) -> (i32, i32) {
    %c0_i32 = arith.constant 0 : i32
    %c0_i32_0 = arith.constant 0 : i32
    return %arg0, %c0_i32 : i32, i32
  }
}

</mosaic_0001>

<bundles_post_ra>
// kernel: maxpool2d_3x3.1
= control target key start
LH: loop header
LB: loop body
LE: loop exit
PB: predicated region body
PF: predicated region fallthrough
CT: control target
= control target key end

     0   :  { %s690_s11 = smov 126   ;;  %s691_s12 = smov 127   ;;  %vm248_vm0 = vcmask 1045504   ;;  %vm249_vm1 = vcmask 1046528   ;;  %v697_v4 = vmov 65535   ;;  %v698_v6 = vmov 0.0   ;;  %s973_s0 = inlined_call_operand.vmem [shape: f32[40,48], index: 0, kind: input, shape index: {}]   ;;  %s974_s1 = inlined_call_operand.vmem [shape: bf16[13,5], index: 1, kind: input, shape index: {}]   ;;  %s975_s2 = inlined_call_operand.vmem [shape: f32[40,5], index: 2, kind: output, shape index: {}]  }
   0x1   :  { %v721_v0 = vld [vmem:[%s973_s0] sm:$0xff]  ;;  %v730_v1 = vld [vmem:[%s973_s0 + $0x8] sm:$0xff]  ;;  %s692_s15 = smov 112   ;;  %s693_s16 = smov 111   ;;  %v747_v2 = vld [vmem:[%s973_s0 + $0x18] sm:$0xff]  ;;  %v250_v5 = vsel %vm248_vm0, 4294967295, %v697_v4  ;;  %603 = vmatprep.subr.bf16.mxu1 %v698_v6  ;;  %617 = vmatprep.subr.bf16.mxu0 %v698_v6 }
   0x2   :  { %42 = vrot.lane.b32.xlu1 %v721_v0, %s690_s11  ;;  %22 = vrot.lane.b32.xlu0 %v721_v0, %s691_s12  ;;  %v752_v3 = vld [vmem:[%s973_s0 + $0x10] sm:$0xff]  ;;  %s694_s21 = smov 110   ;;  %s695_s22 = smov 96   ;;  %v689_v7 = vld [vmem:[%s974_s1] sm:$0x7f]   ;;  %v251_v8 = vsel %vm249_vm1, %v250_v5, 0 }
   0x3   :  { %s696_s23 = smov 95   ;;  %v787_v9 = vand.u32 %v689_v7, %v251_v8  ;;  %s699_s26 = smov 94   ;;  %v794_v10 = vld [vmem:[%s973_s0 + $0x20] sm:$0xff]  ;;  %vm700_vm2 = vmmov 0   ;;  %vm238_vm5 = vcmask 105472  }
   0x4   :  { %605 = vmatprep.mubr.msk.bf16.mxu1 %vm700_vm2, %v698_v6  ;;  %619 = vmatprep.mubr.msk.bf16.mxu0 %vm700_vm2, %v698_v6 }
   0x5   :  { %604 = vmatpush3.bf16.msra.mxu1 %v787_v9  ;;  %618 = vmatpush3.bf16.msra.mxu0 %v787_v9 }
   0x6   :  { %44 = vrot.lane.b32.xlu1 %v730_v1, %s690_s11  ;;  %24 = vrot.lane.b32.xlu0 %v730_v1, %s691_s12 }
   0x7   :  { %645 = vmatprep.subr.bf16.mxu1 %v698_v6  ;;  %631 = vmatprep.subr.bf16.mxu0 %v698_v6 }
   0xa   :  { %64 = vrot.lane.b32.xlu1 %v730_v1, %s692_s15  ;;  %62 = vrot.lane.b32.xlu0 %v721_v0, %s692_s15 }
   0xe   :  { %84 = vrot.lane.b32.xlu1 %v730_v1, %s693_s16  ;;  %82 = vrot.lane.b32.xlu0 %v721_v0, %s693_s16 }
  0x12   :  { %28 = vrot.lane.b32.xlu1 %v747_v2, %s691_s12  ;;  %26 = vrot.lane.b32.xlu0 %v752_v3, %s691_s12 }
  0x16   :  { %104 = vrot.lane.b32.xlu1 %v730_v1, %s694_s21  ;;  %102 = vrot.lane.b32.xlu0 %v721_v0, %s694_s21 }
  0x1a   :  { %48 = vrot.lane.b32.xlu1 %v747_v2, %s690_s11  ;;  %46 = vrot.lane.b32.xlu0 %v752_v3, %s690_s11 }
  0x1e   :  { %124 = vrot.lane.b32.xlu1 %v730_v1, %s695_s22  ;;  %122 = vrot.lane.b32.xlu0 %v721_v0, %s695_s22 }
  0x22   :  { %68 = vrot.lane.b32.xlu1 %v747_v2, %s692_s15  ;;  %66 = vrot.lane.b32.xlu0 %v752_v3, %s692_s15 }
  0x26   :  { %144 = vrot.lane.b32.xlu1 %v730_v1, %s696_s23  ;;  %142 = vrot.lane.b32.xlu0 %v721_v0, %s696_s23 }
  0x2a   :  { %88 = vrot.lane.b32.xlu1 %v747_v2, %s693_s16  ;;  %86 = vrot.lane.b32.xlu0 %v752_v3, %s693_s16 }
  0x2e   :  { %164 = vrot.lane.b32.xlu1 %v730_v1, %s699_s26  ;;  %162 = vrot.lane.b32.xlu0 %v721_v0, %s699_s26 }
  0x32   :  { %106 = vrot.lane.b32.xlu1 %v752_v3, %s694_s21  ;;  %30 = vrot.lane.b32.xlu0 %v794_v10, %s691_s12 }
  0x36   :  { %50 = vrot.lane.b32.xlu1 %v794_v10, %s690_s11  ;;  %108 = vrot.lane.b32.xlu0 %v747_v2, %s694_s21 }
  0x3a   :  { %128 = vrot.lane.b32.xlu1 %v747_v2, %s695_s22  ;;  %126 = vrot.lane.b32.xlu0 %v752_v3, %s695_s22 }
  0x3e   :  { %146 = vrot.lane.b32.xlu1 %v752_v3, %s696_s23  ;;  %70 = vrot.lane.b32.xlu0 %v794_v10, %s692_s15 }
  0x42   :  { %90 = vrot.lane.b32.xlu1 %v794_v10, %s693_s16  ;;  %148 = vrot.lane.b32.xlu0 %v747_v2, %s696_s23 }
  0x46   :  { %168 = vrot.lane.b32.xlu1 %v747_v2, %s699_s26  ;;  %166 = vrot.lane.b32.xlu0 %v752_v3, %s699_s26 }
  0x4a   :  { %110 = vrot.lane.b32.xlu0 %v794_v10, %s694_s21  ;;  %130 = vrot.lane.b32.xlu1 %v794_v10, %s695_s22 }
  0x4e   :  { %150 = vrot.lane.b32.xlu0 %v794_v10, %s696_s23  ;;  %170 = vrot.lane.b32.xlu1 %v794_v10, %s699_s26 }
  0x74   :  { %v43_v11 = vpop.permute.xlu1 %42  ;;  %v23_v12 = vpop.permute.xlu0 %22 }
  0x75   :  { %v37_v28 = vmax.f32 %v721_v0, %v23_v12 }
  0x77   :  { %v57_v32 = vmax.f32 %v37_v28, %v43_v11 }
  0x78   :  { %v45_v13 = vpop.permute.xlu1 %44  ;;  %v25_v14 = vpop.permute.xlu0 %24 }
  0x79   :  { %v38_v25 = vmax.f32 %v730_v1, %v25_v14 }
  0x7b   :  { %v58_v29 = vmax.f32 %v38_v25, %v45_v13 }
  0x7c   :  { %v65_v15 = vpop.permute.xlu1 %64  ;;  %v63_v16 = vpop.permute.xlu0 %62 }
  0x7d   :  { %v78_v33 = vmax.f32 %v58_v29, %v65_v15  ;;  %v77_v34 = vmax.f32 %v57_v32, %v63_v16 }
  0x80   :  { %v85_v17 = vpop.permute.xlu1 %84  ;;  %v83_v18 = vpop.permute.xlu0 %82 }
  0x81   :  { %v98_v37 = vmax.f32 %v78_v33, %v85_v17  ;;  %v97_v38 = vmax.f32 %v77_v34, %v83_v18 }
  0x84   :  { %v29_v19 = vpop.permute.xlu1 %28  ;;  %v27_v20 = vpop.permute.xlu0 %26 }
  0x85   :  { %v40_v0 = vmax.f32 %v747_v2, %v29_v19  ;;  %v39_v1 = vmax.f32 %v752_v3, %v27_v20 }
  0x88   :  { %v105_v21 = vpop.permute.xlu1 %104  ;;  %v103_v22 = vpop.permute.xlu0 %102 }
  0x89   :  { %v118_v39 = vmax.f32 %v98_v37, %v105_v21  ;;  %v117_v40 = vmax.f32 %v97_v38, %v103_v22 }
  0x8c   :  { %v49_v23 = vpop.permute.xlu1 %48  ;;  %v47_v24 = vpop.permute.xlu0 %46 }
  0x8d   :  { %v60_v11 = vmax.f32 %v40_v0, %v49_v23  ;;  %v59_v12 = vmax.f32 %v39_v1, %v47_v24 }
  0x90   :  { %v125_v26 = vpop.permute.xlu1 %124  ;;  %v123_v27 = vpop.permute.xlu0 %122 }
  0x91   :  { %v138_v43 = vmax.f32 %v118_v39, %v125_v26  ;;  %v137_v44 = vmax.f32 %v117_v40, %v123_v27 }
  0x94   :  { %v69_v30 = vpop.permute.xlu1 %68  ;;  %v67_v31 = vpop.permute.xlu0 %66 }
  0x95   :  { %v80_v14 = vmax.f32 %v60_v11, %v69_v30  ;;  %v79_v15 = vmax.f32 %v59_v12, %v67_v31 }
  0x98   :  { %v145_v35 = vpop.permute.xlu1 %144  ;;  %v143_v36 = vpop.permute.xlu0 %142 }
  0x99   :  { %v158_v45 = vmax.f32 %v138_v43, %v145_v35  ;;  %v157_v46 = vmax.f32 %v137_v44, %v143_v36 }
  0x9c   :  { %v89_v41 = vpop.permute.xlu1 %88  ;;  %v87_v42 = vpop.permute.xlu0 %86 }
  0x9d   :  { %v100_v2 = vmax.f32 %v80_v14, %v89_v41  ;;  %v99_v3 = vmax.f32 %v79_v15, %v87_v42  ;;  %v701_v14 = vmov 2.0  }
  0xa0   :  { %v165_v47 = vpop.permute.xlu1 %164  ;;  %v163_v48 = vpop.permute.xlu0 %162 }
  0xa1   :  { %v835_v49 = vmax.f32 %v158_v45, %v165_v47  ;;  %v837_v50 = vmax.f32 %v157_v46, %v163_v48 }
  0xa3   :  { %v183_v51 = vand.u32 2147483647, %v835_v49  ;;  %v182_v52 = vand.u32 2147483647, %v837_v50  ;;  %vm447_vm9 = vcmp.gt.f32.partialorder %v835_v49, 0.0  ;;  %vm446_vm10 = vcmp.gt.f32.partialorder %v837_v50, 0.0 }
  0xa4   :  { %v107_v53 = vpop.permute.xlu1 %106  ;;  %v31_v54 = vpop.permute.xlu0 %30  ;;  %vm193_vm11 = vcmp.ne.f32.partialorder %v835_v49, %v835_v49  ;;  %v452_v15 = vsel %vm447_vm9, 1.0, %v701_v14  ;;  %vm192_vm12 = vcmp.ne.f32.partialorder %v837_v50, %v837_v50 }
  0xa5   :  { %vm841_vm3 = vcmp.lt.f32.partialorder %v183_v51, inf  ;;  %vm845_vm4 = vcmp.lt.f32.partialorder %v182_v52, inf  ;;  %v119_v22 = vmax.f32 %v99_v3, %v107_v53  ;;  %v41_v27 = vmax.f32 %v794_v10, %v31_v54 }
  0xa6   :  { %v198_v57 = vsel %vm841_vm3, %v835_v49, 0.0  ;;  %v197_v58 = vsel %vm845_vm4, %v837_v50, 0.0 }
  0xa7   :  { %v855_v59 = vpack.c.bf16 %v198_v57, %v197_v58 }
  0xa8   :  { %v51_v60 = vpop.permute.xlu1 %50  ;;  %v109_v61 = vpop.permute.xlu0 %108 }
  0xa9   :  { %v205_v62 = vunpack.c.l.bf16 %v855_v59  ;;  %v206_v63 = vunpack.c.h.bf16 %v855_v59  ;;  %v120_v23 = vmax.f32 %v100_v2, %v109_v61  ;;  %v61_v30 = vmax.f32 %v41_v27, %v51_v60 }
  0xab   :  { %v210_v4 = vsub.f32 %v197_v58, %v205_v62  ;;  %v211_v5 = vsub.f32 %v198_v57, %v206_v63 }
  0xac   :  { %v129_v7 = vpop.permute.xlu1 %128  ;;  %v127_v8 = vpop.permute.xlu0 %126 }
  0xad   :  { %v215_v13 = vpack.c.bf16 %v211_v5, %v210_v4  ;;  %v140_v28 = vmax.f32 %v120_v23, %v129_v7  ;;  %v139_v29 = vmax.f32 %v119_v22, %v127_v8 }
  0xaf   :  { %606 = vmatmul.mubr.msk.bf16.vlgmr.msra.gmra.mrb[0].mxu1 %vm238_vm5, %v215_v13  ;;  %v218_v16 = vunpack.c.l.bf16 %v215_v13  ;;  %v219_v17 = vunpack.c.h.bf16 %v215_v13 }
  0xb0   :  { %v147_v18 = vpop.permute.xlu1 %146  ;;  %v71_v21 = vpop.permute.xlu0 %70  ;;  %609 = vmatprep.mubr.msk.bf16.mxu1 %vm700_vm2, %v698_v6  ;;  %646 = vmatpush3.bf16.msra.mxu1 %v787_v9 }
  0xb1   :  { %v223_v19 = vsub.f32 %v210_v4, %v218_v16  ;;  %v224_v20 = vsub.f32 %v211_v5, %v219_v17  ;;  %v159_v31 = vmax.f32 %v139_v29, %v147_v18  ;;  %v81_v35 = vmax.f32 %v61_v30, %v71_v21 }
  0xb2   :  { %v451_v16 = vsel %vm446_vm10, 1.0, %v701_v14  ;;  %v457_v18 = vsel %vm193_vm11, 3.0, %v452_v15 }
  0xb3   :  { %v228_v24 = vpack.c.bf16 %v224_v20, %v223_v19  ;;  %v456_v21 = vsel %vm192_vm12, 3.0, %v451_v16  ;;  %v462_v50 = vsel %vm841_vm3, 0.0, %v457_v18 }
  0xb4   :  { %v91_v25 = vpop.permute.xlu1 %90  ;;  %v149_v26 = vpop.permute.xlu0 %148  ;;  %v461_v3 = vsel %vm845_vm4, 0.0, %v456_v21 }
  0xb5   :  { %620 = vmatmul.mubr.msk.bf16.vlgmr.msra.gmra.mrb[0].mxu0 %vm238_vm5, %v228_v24  ;;  %v160_v32 = vmax.f32 %v140_v28, %v149_v26  ;;  %v101_v10 = vmax.f32 %v81_v35, %v91_v25  ;;  %v466_v23 = vpack.c.bf16 %v462_v50, %v461_v3 }
  0xb6   :  { %632 = vmatpush3.bf16.msra.mxu0 %v787_v9  ;;  %623 = vmatprep.mubr.msk.bf16.mxu0 %vm700_vm2, %v698_v6 }
  0xb8   :  { %v169_v33 = vpop.permute.xlu1 %168  ;;  %v167_v34 = vpop.permute.xlu0 %166 }
  0xb9   :  { %v870_v36 = vmax.f32 %v160_v32, %v169_v33  ;;  %v872_v37 = vmax.f32 %v159_v31, %v167_v34 }
  0xbb   :  { %v185_v38 = vand.u32 2147483647, %v870_v36  ;;  %v184_v39 = vand.u32 2147483647, %v872_v37  ;;  %vm449_vm13 = vcmp.gt.f32.partialorder %v870_v36, 0.0  ;;  %vm448_vm14 = vcmp.gt.f32.partialorder %v872_v37, 0.0 }
  0xbc   :  { %v111_v40 = vpop.permute.xlu0 %110  ;;  %v131_v9 = vpop.permute.xlu1 %130  ;;  %vm195_vm15 = vcmp.ne.f32.partialorder %v870_v36, %v870_v36  ;;  %v454_v20 = vsel %vm449_vm13, 1.0, %v701_v14  ;;  %vm194_vm0 = vcmp.ne.f32.partialorder %v872_v37, %v872_v37  ;;  %v453_v22 = vsel %vm448_vm14, 1.0, %v701_v14 }
  0xbd   :  { %vm876_vm6 = vcmp.lt.f32.partialorder %v185_v38, inf  ;;  %vm880_vm7 = vcmp.lt.f32.partialorder %v184_v39, inf  ;;  %v121_v43 = vmax.f32 %v101_v10, %v111_v40  ;;  %v458_v55 = vsel %vm194_vm0, 3.0, %v453_v22 }
  0xbe   :  { %v200_v44 = vsel %vm876_vm6, %v870_v36, 0.0  ;;  %v199_v45 = vsel %vm880_vm7, %v872_v37, 0.0  ;;  %v459_v56 = vsel %vm195_vm15, 3.0, %v454_v20  ;;  %v463_v24 = vsel %vm880_vm7, 0.0, %v458_v55 }
  0xbf   :  { %v890_v46 = vpack.c.bf16 %v200_v44, %v199_v45  ;;  %v141_v47 = vmax.f32 %v121_v43, %v131_v9  ;;  %v464_v25 = vsel %vm876_vm6, 0.0, %v459_v56  ;;  %v702_v43 = vmov -inf  }
  0xc0   :  { %v151_v48 = vpop.permute.xlu0 %150  ;;  %v171_v51 = vpop.permute.xlu1 %170  ;;  %v467_v27 = vpack.c.bf16 %v464_v25, %v463_v24  ;;  %vm564_vm7 = vcmask 39936  }
  0xc1   :  { %v161_v52 = vmax.f32 %v141_v47, %v151_v48  ;;  %v207_v53 = vunpack.c.l.bf16 %v890_v46  ;;  %v208_v54 = vunpack.c.h.bf16 %v890_v46 }
  0xc3   :  { %v181_v57 = vmax.f32 %v161_v52, %v171_v51  ;;  %v212_v58 = vsub.f32 %v199_v45, %v207_v53  ;;  %v213_v60 = vsub.f32 %v200_v44, %v208_v54 }
  0xc5   :  { %v186_v61 = vand.u32 2147483647, %v181_v57  ;;  %v216_v62 = vpack.c.bf16 %v213_v60, %v212_v58  ;;  %vm450_vm1 = vcmp.gt.f32.partialorder %v181_v57, 0.0  ;;  %vm196_vm3 = vcmp.ne.f32.partialorder %v181_v57, %v181_v57 }
  0xc6   :  { %v455_v26 = vsel %vm450_vm1, 1.0, %v701_v14 }
  0xc7   :  { %vm894_vm8 = vcmp.lt.f32.partialorder %v186_v61, inf  ;;  %610 = vmatmul.mubr.msk.bf16.gmra.mrb[4].mxu1 %vm238_vm5, %v216_v62  ;;  %v220_v0 = vunpack.c.l.bf16 %v216_v62  ;;  %v221_v1 = vunpack.c.h.bf16 %v216_v62  ;;  %v460_v28 = vsel %vm196_vm3, 3.0, %v455_v26 }
  0xc8   :  { %v201_v4 = vsel %vm894_vm8, %v181_v57, 0.0  ;;  %613 = vmatprep.mubr.msk.bf16.mxu1 %vm700_vm2, %v698_v6  ;;  %v465_v29 = vsel %vm894_vm8, 0.0, %v460_v28 }
  0xc9   :  { %v204_v5 = vpack.c.bf16 %v201_v4, %v201_v4  ;;  %v225_v7 = vsub.f32 %v212_v58, %v220_v0  ;;  %v226_v8 = vsub.f32 %v213_v60, %v221_v1  ;;  %v468_v30 = vpack.c.bf16 %v465_v29, %v465_v29 }
  0xcb   :  { %v229_v11 = vpack.c.bf16 %v226_v8, %v225_v7  ;;  %v209_v12 = vunpack.c.l.bf16 %v204_v5 }
  0xcd   :  { %624 = vmatmul.mubr.msk.bf16.gmra.mrb[4].mxu0 %vm238_vm5, %v229_v11  ;;  %v214_v13 = vsub.f32 %v201_v4, %v209_v12 }
  0xce   :  { %627 = vmatprep.mubr.msk.bf16.mxu0 %vm700_vm2, %v698_v6 }
  0xcf   :  { %v217_v17 = vpack.c.bf16 %v214_v13, %v214_v13 }
  0xd1   :  { %v222_v2 = vunpack.c.l.bf16 %v217_v17  ;;  %614 = vmatmul.mubr.msk.bf16.gmra.mrb[8].mxu1 %vm238_vm5, %v217_v17 }
  0xd2   :  { %647 = vmatprep.mubr.msk.bf16.mxu1 %vm700_vm2, %v698_v6 }
  0xd3   :  { %v227_v49 = vsub.f32 %v214_v13, %v222_v2 }
  0xd5   :  { %v230_v19 = vpack.c.bf16 %v227_v49, %v227_v49 }
  0xd7   :  { %628 = vmatmul.mubr.msk.bf16.gmra.mrb[8].mxu0 %vm238_vm5, %v230_v19 }
  0xd8   :  { %633 = vmatprep.mubr.msk.bf16.mxu0 %vm700_vm2, %v698_v6 }
  0xd9   :  { %648 = vmatmul.mubr.msk.bf16.vlgmr.msra.gmra.mrb[12].mxu1 %vm238_vm5, %v466_v23 }
  0xda   :  { %651 = vmatprep.mubr.msk.bf16.mxu1 %vm700_vm2, %v698_v6 }
  0xdf   :  { %634 = vmatmul.mubr.msk.bf16.vlgmr.msra.gmra.mrb[0].mxu0 %vm238_vm5, %v855_v59 }
  0xe0   :  { %637 = vmatprep.mubr.msk.bf16.mxu0 %vm700_vm2, %v698_v6 }
  0xe1   :  { %652 = vmatmul.mubr.msk.bf16.gmra.mrb[16].mxu1 %vm238_vm5, %v467_v27 }
  0xe2   :  { %655 = vmatprep.mubr.msk.bf16.mxu1 %vm700_vm2, %v698_v6 }
  0xe7   :  { %638 = vmatmul.mubr.msk.bf16.gmra.mrb[4].mxu0 %vm238_vm5, %v890_v46 }
  0xe8   :  { %641 = vmatprep.mubr.msk.bf16.mxu0 %vm700_vm2, %v698_v6 }
  0xe9   :  { %656 = vmatmul.mubr.msk.bf16.gmra.mrb[20].mxu1 %vm238_vm5, %v468_v30 }
  0xef   :  { %642 = vmatmul.mubr.msk.bf16.gmra.mrb[8].mxu0 %vm238_vm5, %v204_v5 }
 0x182   :  { %v289_v59 = vpop.f32.mrb[0].mxu1 }
 0x183   :  { %v607_v31 = vpop.f32.mrb[1].mxu1 }
 0x184   :  { %v292_v32 = vpop.f32.mrb[2].mxu1 }
 0x185   :  { %v608_v33 = vpop.f32.mrb[3].mxu1 }
 0x19a   :  { %v297_v34 = vpop.f32.mrb[4].mxu1 }
 0x19b   :  { %v611_v35 = vpop.f32.mrb[5].mxu1 }
 0x19c   :  { %v300_v36 = vpop.f32.mrb[6].mxu1 }
 0x19d   :  { %v612_v37 = vpop.f32.mrb[7].mxu1 }
 0x1a4   :  { %v950_v10 = vpop.f32.mrb[8].mxu1 }
 0x1a5   :  { %v615_v38 = vpop.f32.mrb[9].mxu1 }
 0x1a6   :  { %v308_v39 = vpop.f32.mrb[10].mxu1 }
 0x1a7   :  { %v616_v40 = vpop.f32.mrb[11].mxu1 }
 0x1ac   :  { %v512_v9 = vpop.f32.mrb[12].mxu1 }
 0x1ad   :  { %v649_v41 = vpop.f32.mrb[13].mxu1  ;;  %vm539_vm2 = vcmp.eq.f32.partialorder %v512_v9, 1.0  ;;  %vm534_vm5 = vcmp.eq.f32.partialorder %v512_v9, 3.0  ;;  %vm554_vm8 = vcmp.gt.f32.partialorder %v512_v9, 0.0 }
 0x1ae   :  { %v515_v6 = vpop.f32.mrb[14].mxu1  ;;  %v544_v44 = vsel %vm539_vm2, inf, %v702_v43 }
 0x1af   :  { %v650_v42 = vpop.f32.mrb[15].mxu1  ;;  %vm540_vm4 = vcmp.eq.f32.partialorder %v515_v6, 1.0  ;;  %vm535_vm6 = vcmp.eq.f32.partialorder %v515_v6, 3.0  ;;  %v549_v51 = vsel %vm534_vm5, nan, %v544_v44  ;;  %vm555_vm9 = vcmp.gt.f32.partialorder %v515_v6, 0.0 }
 0x1b0   :  { %v545_v46 = vsel %vm540_vm4, inf, %v702_v43 }
 0x1b1   :  { %v550_v61 = vsel %vm535_vm6, nan, %v545_v46 }
 0x1b2   :  { %v419_v45 = vpop.f32.mrb[0].mxu0 }
 0x1b3   :  { %v659_v47 = vadd.f32 %v419_v45, %v289_v59  ;;  %v635_v48 = vpop.f32.mrb[1].mxu0 }
 0x1b4   :  { %v422_v52 = vpop.f32.mrb[2].mxu0  ;;  %v520_v53 = vpop.f32.mrb[16].mxu1 }
 0x1b5   :  { %v559_v54 = vsel %vm554_vm8, %v549_v51, %v659_v47  ;;  %v660_v57 = vadd.f32 %v422_v52, %v292_v32  ;;  %v636_v58 = vpop.f32.mrb[3].mxu0  ;;  %v653_v60 = vpop.f32.mrb[17].mxu1  ;;  %vm541_vm10 = vcmp.eq.f32.partialorder %v520_v53, 1.0  ;;  %vm536_vm12 = vcmp.eq.f32.partialorder %v520_v53, 3.0 }
 0x1b6   :  { %565 = vst.msk [vmem:[%s975_s2] sm:$0xff] %vm564_vm7, %v559_v54  ;;  %v523_v62 = vpop.f32.mrb[18].mxu1  ;;  %v546_v1 = vsel %vm541_vm10, inf, %v702_v43  ;;  %vm556_vm14 = vcmp.gt.f32.partialorder %v520_v53, 0.0 }
 0x1b7   :  { %v560_v63 = vsel %vm555_vm9, %v550_v61, %v660_v57  ;;  %v654_v0 = vpop.f32.mrb[19].mxu1  ;;  %vm542_vm11 = vcmp.eq.f32.partialorder %v523_v62, 1.0  ;;  %vm537_vm13 = vcmp.eq.f32.partialorder %v523_v62, 3.0  ;;  %v551_v11 = vsel %vm536_vm12, nan, %v546_v1 }
 0x1b8   :  { %566 = vst.msk [vmem:[%s975_s2 + $0x8] sm:$0xff] %vm564_vm7, %v560_v63  ;;  %v547_v5 = vsel %vm542_vm11, inf, %v702_v43  ;;  %vm557_vm15 = vcmp.gt.f32.partialorder %v523_v62, 0.0 }
 0x1b9   :  { %v552_v18 = vsel %vm537_vm13, nan, %v547_v5 }
 0x1ba   :  { %v427_v4 = vpop.f32.mrb[4].mxu0 }
 0x1bb   :  { %v661_v7 = vadd.f32 %v427_v4, %v297_v34  ;;  %v639_v8 = vpop.f32.mrb[5].mxu0 }
 0x1bc   :  { %v430_v12 = vpop.f32.mrb[6].mxu0  ;;  %v528_v13 = vpop.f32.mrb[20].mxu1 }
 0x1bd   :  { %v561_v14 = vsel %vm556_vm14, %v551_v11, %v661_v7  ;;  %v662_v15 = vadd.f32 %v430_v12, %v300_v36  ;;  %v640_v16 = vpop.f32.mrb[7].mxu0  ;;  %v657_v17 = vpop.f32.mrb[21].mxu1  ;;  %vm543_vm0 = vcmp.eq.f32.partialorder %v528_v13, 1.0  ;;  %vm538_vm1 = vcmp.eq.f32.partialorder %v528_v13, 3.0 }
 0x1be   :  { %567 = vst.msk [vmem:[%s975_s2 + $0x10] sm:$0xff] %vm564_vm7, %v561_v14  ;;  %v531_v21 = vpop.f32.mrb[22].mxu1  ;;  %v548_v50 = vsel %vm543_vm0, inf, %v702_v43  ;;  %vm558_vm3 = vcmp.gt.f32.partialorder %v528_v13, 0.0 }
 0x1bf   :  { %v562_v2 = vsel %vm557_vm15, %v552_v18, %v662_v15  ;;  %v658_v49 = vpop.f32.mrb[23].mxu1  ;;  %v553_v22 = vsel %vm538_vm1, nan, %v548_v50 }
 0x1c0   :  { %568 = vst.msk [vmem:[%s975_s2 + $0x18] sm:$0xff] %vm564_vm7, %v562_v2 }
 0x1c2   :  { %v435_v3 = vpop.f32.mrb[8].mxu0 }
 0x1c3   :  { %v663_v19 = vadd.f32 %v435_v3, %v950_v10  ;;  %v643_v20 = vpop.f32.mrb[9].mxu0 }
 0x1c4   :  { %v438_v23 = vpop.f32.mrb[10].mxu0 }
 0x1c5   :  { %v563_v55 = vsel %vm558_vm3, %v553_v22, %v663_v19  ;;  %v644_v56 = vpop.f32.mrb[11].mxu0 }
 0x1c6   :  { %569 = vst.msk [vmem:[%s975_s2 + $0x20] sm:$0xff] %vm564_vm7, %v563_v55 }

</bundles_post_ra>
